<compile_context>
chip_gen: v6e
topology: v6e:2x2x1
jax: 0.10.0
libtpu: 0.0.40
codegen_flags: <defaults>
</compile_context>

<pallas_src>
import functools
import numpy as np

import jax
import jax.numpy as jnp
from jax.experimental import pallas as pl
from jax.experimental.pallas import tpu as pltpu

_SQRT2 = float(np.sqrt(2.0))


def _group_fc_kernel(*refs, tile_g, weight_gain, activation, has_bias):
    it = iter(refs)
    x_ref = next(it)                              # [TILE_B, TILE_G*Din]
    w_ref = next(it)                              # [Din, TILE_G*Dout]  compact, lane-dense
    mask_ref = next(it) if tile_g > 1 else None   # [TILE_G*Din, TILE_G*Dout] resident 0/1
    b_ref = next(it) if has_bias else None        # [1, TILE_G*Dout] f32, pre-scaled
    o_ref = next(it)                              # [TILE_B, TILE_G*Dout]

    x = x_ref[...]
    # weight_gain fuses with the dtype cast on the small compact weight block
    # (Din x TILE_G*Dout), not on the larger [TILE_B, N] f32 result.
    w = w_ref[...].astype(x.dtype) * weight_gain

    if tile_g > 1:
        # Expand to the block-diagonal tile: one tile + one VPU multiply against the
        # resident mask (iota / divide / compare / select hoisted to the wrapper).
        wbd = jnp.tile(w, (tile_g, 1)) * mask_ref[...]
    else:
        wbd = w

    # One wide MXU matmul covering all TILE_G groups, f32 accumulation.
    y = jnp.dot(x, wbd, preferred_element_type=jnp.float32)   # [TILE_B, TILE_G*Dout]

    if has_bias:
        y = y + b_ref[...]               # bias already f32 and bias_gain-scaled (broadcasts)

    if activation == 'linear':
        pass
    elif activation == 'lrelu':
        # bias_act 'lrelu': leaky_relu(., 0.2) * sqrt(2) — constants fused into the arms.
        c_pos = np.float32(_SQRT2)
        c_neg = np.float32(0.2 * _SQRT2)
        y = jnp.where(y >= 0, y * c_pos, y * c_neg)
    else:
        # TODO(synk): other bias_act activations (relu/tanh/sigmoid/swish/...) not wired up.
        raise NotImplementedError(activation)

    o_ref[...] = y.astype(o_ref.dtype)


def _vmem_limit_bytes():
    """Per-chip VMEM limit: ~3/4 of physical capacity, capped at 96 MiB.

    v7x (64 MiB physical) -> 48 MiB; v5e/v6e (128 MiB physical) -> 96 MiB.
    """
    cap = 128 * 1024 * 1024
    try:
        cap = int(pltpu.get_tpu_info().vmem_capacity_bytes)
    except Exception:
        pass
    return int(min(cap * 3 // 4, 96 * 1024 * 1024))


def _select_tile_g(G, Din, Dout):
    """Smallest divisor of G whose x/out block last dims are lane-dense (multiple of 128)
    or the full extent (tile_g == G).

    The block-diagonal matmul's useful fraction is 1/tile_g, so tile_g is never grown past
    the lane-dense minimum; per-step overhead is amortised with batch tiling instead.
    """
    for tg in range(1, G + 1):
        if G % tg:
            continue
        if tg == G or ((tg * Din) % 128 == 0 and (tg * Dout) % 128 == 0):
            return tg
    return G


def _select_tile_b(B, tile_g, Din, Dout, itemsize, vmem_limit):
    """Largest batch tile (multiple of 8, or the full batch) fitting ~half the VMEM limit."""
    kdim = tile_g * Din
    ndim = tile_g * Dout
    isz = max(int(itemsize), 4)
    # Fixed footprint: double-buffered compact weight block, resident mask, in-kernel
    # tiled/block-diagonal temporaries, and the (tiny) bias block.
    fixed = (2 * Din * ndim + 3 * kdim * ndim + 2 * ndim) * isz
    budget = max(vmem_limit // 2 - fixed, 1 << 20)
    # Per-batch-row footprint: double-buffered x and out blocks plus the f32 accumulator row.
    per_row = 2 * (kdim + ndim) * isz + ndim * 4
    max_tb = min(max(budget // per_row, 8), 512)
    if B <= max_tb:
        return B
    return (int(max_tb) // 8) * 8


def group_fully_connected(x, weight, bias=None, *, lr_multiplier=1,
                          activation='linear', tile_g=None, tile_b=None):
    """Forward pass of GroupFullyConnectedLayer.

    x:      [B, G, Din]  (or [B, G*Din])
    weight: [G, Din, Dout]
    bias:   [G*Dout] or None
    returns [B, G, Dout]
    """
    G, Din, Dout = weight.shape
    B = x.shape[0]
    x_flat = x.reshape(B, G * Din)                       # contiguous -> free

    weight_gain = float(lr_multiplier / np.sqrt(Din))
    bias_gain = float(lr_multiplier)
    itemsize = jnp.dtype(x.dtype).itemsize

    vmem_limit = _vmem_limit_bytes()

    if tile_g is None:
        tile_g = _select_tile_g(G, Din, Dout)
    assert G % tile_g == 0
    ng = G // tile_g

    if tile_b is None:
        tile_b = _select_tile_b(B, tile_g, Din, Dout, itemsize, vmem_limit)
        # v7x (2 TensorCores, 64 MiB VMEM): prefer >= 2 total grid steps so the parallel
        # axes can shard across both cores.  Single-TC chips (v5e/v6e) skip this — extra
        # steps only add overhead there.
        if vmem_limit <= 48 * 1024 * 1024 and ng == 1 and B >= 16 and tile_b >= B:
            tile_b = -(-((B + 1) // 2) // 8) * 8
    nb = -(-B // tile_b)

    # One-time, weight-sized relayout: [ng, Din, TILE_G*Dout] — compact and lane-dense;
    # the kernel expands it to the block-diagonal tile on-chip.
    w_perm = jnp.transpose(weight.reshape(ng, tile_g, Din, Dout),
                           (0, 2, 1, 3)).reshape(ng, Din, tile_g * Dout)

    args = [x_flat, w_perm]
    in_specs = [
        pl.BlockSpec((tile_b, tile_g * Din), lambda g, b: (b, g)),
        # Leading size-1 (ng) dim squeezed out of the kernel ref.
        pl.BlockSpec((None, Din, tile_g * Dout), lambda g, b: (g, 0, 0)),
    ]

    if tile_g > 1:
        # Resident block-diagonal 0/1 mask: constant index_map -> DMA'd once, stays in VMEM.
        mask = np.kron(np.eye(tile_g, dtype=np.float32),
                       np.ones((Din, Dout), dtype=np.float32))
        args.append(jnp.asarray(mask, dtype=x.dtype))
        in_specs.append(
            pl.BlockSpec((tile_g * Din, tile_g * Dout), lambda g, b: (0, 0)))

    has_bias = bias is not None
    if has_bias:
        # Bias stays f32 end-to-end; bias_gain folded in here (array is materialised anyway).
        b_arr = bias.astype(jnp.float32)
        if bias_gain != 1:
            b_arr = b_arr * bias_gain
        b_arr = b_arr.reshape(ng, 1, tile_g * Dout)
        args.append(b_arr)
        in_specs.append(
            pl.BlockSpec((None, 1, tile_g * Dout), lambda g, b: (g, 0, 0)))

    kernel = functools.partial(
        _group_fc_kernel,
        tile_g=tile_g, weight_gain=weight_gain,
        activation=activation, has_bias=has_bias,
    )

    out_flat = pl.pallas_call(
        kernel,
        out_shape=jax.ShapeDtypeStruct((B, G * Dout), x.dtype),
        grid_spec=pltpu.PrefetchScalarGridSpec(
            num_scalar_prefetch=0,
            grid=(ng, nb),                       # b inner: weight/bias/mask reused across b
            in_specs=in_specs,
            out_specs=pl.BlockSpec((tile_b, tile_g * Dout), lambda g, b: (b, g)),
        ),
        compiler_params=pltpu.CompilerParams(
            dimension_semantics=("parallel", "parallel"),
            vmem_limit_bytes=vmem_limit,
        ),
    )(*args)

    return out_flat.reshape(B, G, Dout)


if __name__ == "__main__":
    # Make the f32 matmuls in both the kernel and the jnp references fully f32-accurate so
    # the tight tolerance below is meaningful on every TPU generation.
    jax.config.update("jax_default_matmul_precision", "highest")

    # --- Case 1 & 2: module defaults at a small shape (groups=4, per-group 8 -> 16) ---
    batch = 2
    groups = 4
    in_features = 32         # per_group_in  = 8
    out_features = 64        # per_group_out = 16
    lr_multiplier = 1.0
    bias_init = 0.0

    per_group_in = in_features // groups
    per_group_out = out_features // groups

    key = jax.random.PRNGKey(0)
    kw, kx, kw3, kx3 = jax.random.split(key, 4)

    # Deterministic parameter init mirroring __init__:
    #   weight = randn([groups, per_group_in, per_group_out]) / lr_multiplier
    #   bias   = full([out_features], bias_init)
    weight = (jax.random.normal(kw, (groups, per_group_in, per_group_out),
                                dtype=jnp.float32) / lr_multiplier)
    bias = jnp.full((out_features,), np.float32(bias_init))
    x = jax.random.normal(kx, (batch, groups, per_group_in), dtype=jnp.float32)

    weight_gain = lr_multiplier / np.sqrt(per_group_in)

    # Case 1: bias + linear (module defaults)
    out = group_fully_connected(x, weight, bias,
                                lr_multiplier=lr_multiplier, activation='linear')
    out = jax.block_until_ready(out)
    ref = jnp.einsum('bgi,gio->bgo', x, weight * weight_gain)
    ref = ref + (bias * lr_multiplier).reshape(1, groups, per_group_out)
    assert out.shape == (batch, groups, per_group_out)
    np.testing.assert_allclose(np.asarray(out), np.asarray(ref), rtol=1e-4, atol=1e-4)

    # Case 2: no bias + lrelu (exercises the bias-skip and activation paths)
    out2 = group_fully_connected(x, weight, None,
                                 lr_multiplier=lr_multiplier, activation='lrelu')
    out2 = jax.block_until_ready(out2)
    ref2 = jnp.einsum('bgi,gio->bgo', x, weight * weight_gain)
    ref2 = jnp.where(ref2 >= 0, ref2, 0.2 * ref2) * np.sqrt(2.0)
    np.testing.assert_allclose(np.asarray(out2), np.asarray(ref2), rtol=1e-4, atol=1e-4)

    # --- Case 3: lane-dense per-group dims (tile_g == 1, no mask), bias + lrelu,
    #             lr_multiplier != 1, multi-group grid ---
    b3, g3, din3, dout3 = 16, 2, 128, 128
    lr3, bias_init3 = 2.0, 0.1
    weight3 = (jax.random.normal(kw3, (g3, din3, dout3), dtype=jnp.float32) / lr3)
    bias3 = jnp.full((g3 * dout3,), np.float32(bias_init3))
    x3 = jax.random.normal(kx3, (b3, g3, din3), dtype=jnp.float32)
    wg3 = lr3 / np.sqrt(din3)

    out3 = group_fully_connected(x3, weight3, bias3,
                                 lr_multiplier=lr3, activation='lrelu')
    out3 = jax.block_until_ready(out3)
    ref3 = jnp.einsum('bgi,gio->bgo', x3, weight3 * wg3)
    ref3 = ref3 + (bias3 * lr3).reshape(1, g3, dout3)
    ref3 = jnp.where(ref3 >= 0, ref3, 0.2 * ref3) * np.sqrt(2.0)
    np.testing.assert_allclose(np.asarray(out3), np.asarray(ref3), rtol=1e-4, atol=1e-4)

    print("KERNEL_OK")
</pallas_src>

<mosaic_0001>
module attributes {stable_mosaic.version = 11 : i64} {
  func.func @_group_fc_kernel(%arg0: i32, %arg1: i32, %arg2: memref<2x32xf32, #tpu.memory_space<vmem>>, %arg3: memref<1x8x64xf32, #tpu.memory_space<vmem>>, %arg4: memref<32x64xf32, #tpu.memory_space<vmem>>, %arg5: memref<1x1x64xf32, #tpu.memory_space<vmem>>, %arg6: memref<2x64xf32, #tpu.memory_space<vmem>>) attributes {dimension_semantics = [#tpu.dimension_semantics<parallel>, #tpu.dimension_semantics<parallel>], iteration_bounds = array<i64: 1, 1>, scalar_prefetch = 0 : i64, scratch_operands = 0 : i64, tpu.core_type = #tpu.core_type<tc>, window_params = [{transform_indices = @transform_0, window_bounds = array<i64: 2, 32>}, {transform_indices = @transform_1, window_bounds = array<i64: 1, 8, 64>}, {pipeline_mode = #tpu.pipeline_mode<synchronous>, transform_indices = @transform_2, window_bounds = array<i64: 32, 64>}, {transform_indices = @transform_3, window_bounds = array<i64: 1, 1, 64>}, {transform_indices = @transform_4, window_bounds = array<i64: 2, 64>}]} {
    %c0 = arith.constant 0 : index
    %c0_0 = arith.constant 0 : index
    %0 = vector.load %arg2[%c0, %c0_0] : memref<2x32xf32, #tpu.memory_space<vmem>>, vector<2x32xf32>
    %c0_1 = arith.constant 0 : index
    %c0_2 = arith.constant 0 : index
    %c0_3 = arith.constant 0 : index
    %1 = vector.load %arg3[%c0_1, %c0_2, %c0_3] : memref<1x8x64xf32, #tpu.memory_space<vmem>>, vector<1x8x64xf32>
    %2 = vector.shape_cast %1 : vector<1x8x64xf32> to vector<8x64xf32>
    %cst = arith.constant 0.353553385 : f32
    %3 = vector.broadcast %cst : f32 to vector<8x64xf32>
    %4 = arith.mulf %2, %3 : vector<8x64xf32>
    %5 = tpu.concatenate %4, %4, %4, %4 in 0 : vector<8x64xf32>, vector<8x64xf32>, vector<8x64xf32>, vector<8x64xf32> -> vector<32x64xf32>
    %c0_4 = arith.constant 0 : index
    %c0_5 = arith.constant 0 : index
    %6 = vector.load %arg4[%c0_4, %c0_5] : memref<32x64xf32, #tpu.memory_space<vmem>>, vector<32x64xf32>
    %7 = arith.mulf %5, %6 : vector<32x64xf32>
    %cst_6 = arith.constant dense<0.000000e+00> : vector<2x64xf32>
    %8 = tpu.matmul %0, %7, %cst_6 {dimension_numbers = #tpu.dot_dimension_numbers<[1], [0], [0], [1], [0, 0, 1, 1], [], []>, precision = #tpu.contract_precision<fp32>} : vector<2x32xf32>, vector<32x64xf32>, vector<2x64xf32> -> vector<2x64xf32>
    %c0_7 = arith.constant 0 : index
    %c0_8 = arith.constant 0 : index
    %c0_9 = arith.constant 0 : index
    %9 = vector.load %arg5[%c0_7, %c0_8, %c0_9] : memref<1x1x64xf32, #tpu.memory_space<vmem>>, vector<1x1x64xf32>
    %10 = vector.shape_cast %9 : vector<1x1x64xf32> to vector<1x64xf32>
    %11 = vector.broadcast %10 : vector<1x64xf32> to vector<2x64xf32>
    %12 = arith.addf %8, %11 : vector<2x64xf32>
    %c0_10 = arith.constant 0 : index
    %c0_11 = arith.constant 0 : index
    %13 = vector.load %arg6[%c0_10, %c0_11] : memref<2x64xf32, #tpu.memory_space<vmem>>, vector<2x64xf32>
    tpu.vector_store %arg6[%c0_10, %c0_11], %12 {strides = array<i32>} : memref<2x64xf32, #tpu.memory_space<vmem>>, vector<2x64xf32>,
    return
  }
  func.func @transform_0(%arg0: i32, %arg1: i32) -> (i32, i32) {
    %c0_i32 = arith.constant 0 : i32
    return %arg1, %arg0 : i32, i32
  }
  func.func @transform_1(%arg0: i32, %arg1: i32) -> (i32, i32, i32) {
    %c0_i32 = arith.constant 0 : i32
    %c0_i32_0 = arith.constant 0 : i32
    %c0_i32_1 = arith.constant 0 : i32
    return %arg0, %c0_i32, %c0_i32_0 : i32, i32, i32
  }
  func.func @transform_2(%arg0: i32, %arg1: i32) -> (i32, i32) {
    %c0_i32 = arith.constant 0 : i32
    %c0_i32_0 = arith.constant 0 : i32
    %c0_i32_1 = arith.constant 0 : i32
    return %c0_i32, %c0_i32_0 : i32, i32
  }
  func.func @transform_3(%arg0: i32, %arg1: i32) -> (i32, i32, i32) {
    %c0_i32 = arith.constant 0 : i32
    %c0_i32_0 = arith.constant 0 : i32
    %c0_i32_1 = arith.constant 0 : i32
    return %arg0, %c0_i32, %c0_i32_0 : i32, i32, i32
  }
  func.func @transform_4(%arg0: i32, %arg1: i32) -> (i32, i32) {
    %c0_i32 = arith.constant 0 : i32
    return %arg1, %arg0 : i32, i32
  }
}

</mosaic_0001>

<bundles_post_ra>
// kernel: tpu_custom_call.1
= control target key start
LH: loop header
LB: loop body
LE: loop exit
PB: predicated region body
PF: predicated region fallthrough
CT: control target
= control target key end

     0   :  { %9 = vsyncpa [#allocation3], 0  ;;  %s885_s0 = inlined_call_operand.hbm [shape: f32[2,32], index: 0, kind: input, shape index: {}]   ;;  %s886_s1 = inlined_call_operand.hbm [shape: f32[1,8,64], index: 1, kind: input, shape index: {}]   ;;  %s887_s2 = inlined_call_operand.hbm [shape: f32[32,64], index: 2, kind: input, shape index: {}]   ;;  %s888_s3 = inlined_call_operand.vmem [shape: f32[1,1,64], index: 3, kind: input, shape index: {}]   ;;  %s889_s4 = inlined_call_operand.hbm [shape: f32[2,64], index: 4, kind: output, shape index: {}]  }
   0x1   :  { %10 = vsyncpa [#allocation6], 0 }
   0x2   :  { %11 = vsyncpa [#allocation4], 0  ;;  %s771_s15 = smov [#allocation5]   ;;  %s772_s17 = smov [#allocation2]  }
   0x3   :  { %s28_s16 = sshll.u32 %s771_s15, 4  ;;  %s18_s18 = sshll.u32 %s772_s17, 4  ;;  %s29_s16 = int_to_ptr.vmem [resolvable:$true] %s28_s16  ;;  %s19_s18 = int_to_ptr.vmem [resolvable:$true] %s18_s18 }
   0x4   :  { %s693_s19 = scalar_lea.vmem %s29_s16, 128  ;;  %p698_p1 = scmp.lt.s32.totalorder %s29_s16, %s29_s16 }
   0x5   :  { %p694_p0 = scmp.ne.s32.totalorder %s29_s16, %s693_s19  ;;  %p699_p2 = scmp.lt.s32.totalorder %s693_s19, %s693_s19 }
   0x7   :  { %p700_p3 = por %p699_p2, %p698_p1 }
   0x9   :  { %p701_p4 = pnand %p700_p3, %p694_p0 }
   0xb   :  { %704 = shalt.err (!%p701_p4)
}
   0xc   :  { %31 = dma.hbm_to_vmem [thread:$0]  %s886_s1, 128, %s29_s16, [#allocation6]  }
   0xd   :  { %s713_s22 = scalar_lea.vmem %s19_s18, 32  ;;  %p718_p6 = scmp.lt.s32.totalorder %s19_s18, %s19_s18 }
   0xe   :  { %p714_p5 = scmp.ne.s32.totalorder %s19_s18, %s713_s22  ;;  %p719_p7 = scmp.lt.s32.totalorder %s713_s22, %s713_s22 }
  0x10   :  { %p720_p8 = por %p719_p7, %p718_p6 }
  0x12   :  { %p721_p9 = pnand %p720_p8, %p714_p5 }
  0x14   :  { %724 = shalt.err (!%p721_p9)
}
  0x15   :  { %21 = dma.hbm_to_vmem [thread:$0]  %s885_s0, 32, %s19_s18, [#allocation3]  }
  0x16   :  { %s773_s25 = smov [#allocation7]  }
  0x17   :  { %s37_s26 = sshll.u32 %s773_s25, 4  ;;  %s38_s26 = int_to_ptr.vmem [resolvable:$true] %s37_s26 }
  0x18   :  { %s733_s27 = scalar_lea.vmem %s38_s26, 512  ;;  %p738_p11 = scmp.lt.s32.totalorder %s38_s26, %s38_s26 }
  0x19   :  { %p734_p10 = scmp.ne.s32.totalorder %s38_s26, %s733_s27  ;;  %p739_p12 = scmp.lt.s32.totalorder %s733_s27, %s733_s27 }
  0x1b   :  { %p740_p13 = por %p739_p12, %p738_p11 }
  0x1d   :  { %p741_p0 = pnand %p740_p13, %p734_p10 }
  0x1f   :  { %744 = shalt.err (!%p741_p0)
}
  0x20   :  { %s774_s1 = smov 128   ;;  %s775_s28 = smov 8  }
  0x21   :  { %43 = dma.hbm_to_vmem [thread:$0]  %s887_s2, 512, %s38_s26, [#allocation6], %s774_s1, %s774_s1, %s775_s28  }
  0x22   :  { %765 = dma.done.wait [#allocation3], 32  }
  0x23   :  { %766 = vsyncadd [#allocation3], 4294967264 }
  0x24   :  { %767 = dma.done.wait [#allocation6], 640  }
  0x25   :  { %768 = vsyncadd [#allocation6], 4294966656  ;;  %v776_v0 = vmov 0.0   ;;  %vm777_vm0 = vmmov 0   ;;  %vm73_vm1 = vcmask 261120   ;;  %v56_v1 = vld [vmem:[#allocation5] sm:$0xff] }
  0x26   :  { %611 = vmatprep.subr.mxu0 %v776_v0  ;;  %622 = vmatprep.subr.mxu1 %v776_v0  ;;  %v61_v2 = vld [vmem:[#allocation7 + $0x18] sm:$0xff]  ;;  %v60_v3 = vld [vmem:[#allocation7 + $0x10] sm:$0xff]  ;;  %v57_v4 = vmul.f32 0.35355338, %v56_v1  ;;  %v59_v5 = vld [vmem:[#allocation7 + $0x8] sm:$0xff]  ;;  %s778_s5 = smov [#allocation8]  }
  0x27   :  { %619 = vmatprep.mubr.msk.f32.mxu0 %vm777_vm0, %v776_v0  ;;  %630 = vmatprep.mubr.msk.f32.mxu1 %vm777_vm0, %v776_v0  ;;  %v58_v6 = vld [vmem:[#allocation7] sm:$0xff]  ;;  %v55_v7 = vld [vmem:[#allocation2] sm:$0x3]  ;;  %s570_s6 = sshll.u32 %s778_s5, 4  ;;  %vm562_vm2 = vcmask 517120   ;;  %s571_s6 = int_to_ptr.vmem [resolvable:$true] %s570_s6 }
  0x28   :  { %v75_v8 = vsel %vm73_vm1, %v55_v7, 0  ;;  %v65_v9 = vmul.f32 %v61_v2, %v57_v4  ;;  %v64_v10 = vmul.f32 %v60_v3, %v57_v4  ;;  %v63_v11 = vmul.f32 %v59_v5, %v57_v4  ;;  %v580_v40 = vld [vmem:[%s888_s3] ss:$0 sm:$0xff]  ;;  %s745_s3 = scalar_lea.vmem %s571_s6, 32  ;;  %p750_p2 = scmp.lt.s32.totalorder %s571_s6, %s571_s6 }
  0x29   :  { %v62_v12 = vmul.f32 %v58_v6, %v57_v4  ;;  %v819_v13 = vand.u32 4294901760, %v75_v8  ;;  %p746_p1 = scmp.ne.s32.totalorder %s571_s6, %s745_s3  ;;  %p751_p3 = scmp.lt.s32.totalorder %s745_s3, %s745_s3 }
  0x2a   :  { %v821_v14 = vand.u32 4294901760, %v65_v9  ;;  %v823_v15 = vand.u32 4294901760, %v64_v10  ;;  %v825_v16 = vand.u32 4294901760, %v63_v11 }
  0x2b   :  { %v827_v17 = vand.u32 4294901760, %v62_v12  ;;  %v147_v18 = vsub.f32 %v75_v8, %v819_v13  ;;  %p752_p4 = por %p751_p3, %p750_p2 }
  0x2c   :  { %612 = vmatpush3.msra.mxu0 %v821_v14  ;;  %v182_v19 = vsub.f32 %v65_v9, %v821_v14  ;;  %v189_v20 = vsub.f32 %v64_v10, %v823_v15  ;;  %v196_v21 = vsub.f32 %v63_v11, %v825_v16 }
  0x2d   :  { %v203_v22 = vsub.f32 %v62_v12, %v827_v17  ;;  %613 = vmatprep.subr.mxu0 %v776_v0  ;;  %v148_v23 = vand.u32 4294901760, %v147_v18  ;;  %p753_p5 = pnand %p752_p4, %p746_p1 }
  0x2e   :  { %614 = vmatpush3.msra.mxu0 %v823_v15  ;;  %v183_v24 = vand.u32 4294901760, %v182_v19  ;;  %v190_v25 = vand.u32 4294901760, %v189_v20  ;;  %v197_v26 = vand.u32 4294901760, %v196_v21 }
  0x2f   :  { %v204_v27 = vand.u32 4294901760, %v203_v22  ;;  %615 = vmatprep.subr.mxu0 %v776_v0  ;;  %v149_v28 = vsub.f32 %v147_v18, %v148_v23 }
  0x30   :  { %616 = vmatpush3.msra.mxu0 %v825_v16  ;;  %v184_v29 = vsub.f32 %v182_v19, %v183_v24  ;;  %v191_v30 = vsub.f32 %v189_v20, %v190_v25  ;;  %v198_v31 = vsub.f32 %v196_v21, %v197_v26 }
  0x31   :  { %617 = vmatprep.subr.mxu0 %v776_v0  ;;  %v150_v32 = vand.u32 4294901760, %v149_v28  ;;  %v205_v35 = vsub.f32 %v203_v22, %v204_v27 }
  0x32   :  { %618 = vmatpush3.msra.mxu0 %v827_v17  ;;  %v185_v33 = vand.u32 4294901760, %v184_v29  ;;  %v192_v34 = vand.u32 4294901760, %v191_v30  ;;  %v199_v36 = vand.u32 4294901760, %v198_v31 }
  0x33   :  { %633 = vmatprep.subr.mxu0 %v776_v0  ;;  %620 = vmatmul.mubr.f32.vlgmr.msra.gmra.mxu0 %v150_v32  ;;  %v206_v37 = vand.u32 4294901760, %v205_v35 }
  0x34   :  { %623 = vmatpush3.msra.mxu1 %v185_v33  ;;  %634 = vmatpush3.msra.mxu0 %v182_v19 }
  0x35   :  { %624 = vmatprep.subr.mxu1 %v776_v0  ;;  %635 = vmatprep.subr.mxu0 %v776_v0 }
  0x36   :  { %625 = vmatpush3.msra.mxu1 %v192_v34  ;;  %636 = vmatpush3.msra.mxu0 %v189_v20 }
  0x37   :  { %626 = vmatprep.subr.mxu1 %v776_v0  ;;  %637 = vmatprep.subr.mxu0 %v776_v0 }
  0x38   :  { %627 = vmatpush3.msra.mxu1 %v199_v36  ;;  %638 = vmatpush3.msra.mxu0 %v196_v21 }
  0x39   :  { %628 = vmatprep.subr.mxu1 %v776_v0  ;;  %639 = vmatprep.subr.mxu0 %v776_v0 }
  0x3a   :  { %629 = vmatpush3.msra.mxu1 %v206_v37  ;;  %640 = vmatpush3.msra.mxu0 %v203_v22 }
  0x3b   :  { %631 = vmatmul.mubr.f32.vlgmr.msra.gmra.mxu1 %v819_v13  ;;  %644 = vmatprep.subr.mxu1 %v776_v0 }
  0x3c   :  { %645 = vmatpush3.msra.mxu1 %v821_v14  ;;  %641 = vmatprep.mubr.msk.f32.mxu0 %vm777_vm0, %v776_v0 }
  0x3d   :  { %646 = vmatprep.subr.mxu1 %v776_v0  ;;  %655 = vmatprep.subr.mxu0 %v776_v0 }
  0x3e   :  { %642 = vmatmul.mubr.f32.vlgmr.msra.gmra.mxu0 %v147_v18  ;;  %647 = vmatpush3.msra.mxu1 %v823_v15 }
  0x3f   :  { %656 = vmatpush3.msra.mxu0 %v183_v24  ;;  %648 = vmatprep.subr.mxu1 %v776_v0 }
  0x40   :  { %657 = vmatprep.subr.mxu0 %v776_v0  ;;  %649 = vmatpush3.msra.mxu1 %v825_v16 }
  0x41   :  { %658 = vmatpush3.msra.mxu0 %v190_v25  ;;  %650 = vmatprep.subr.mxu1 %v776_v0 }
  0x42   :  { %659 = vmatprep.subr.mxu0 %v776_v0  ;;  %651 = vmatpush3.msra.mxu1 %v827_v17 }
  0x43   :  { %652 = vmatprep.mubr.msk.f32.mxu1 %vm777_vm0, %v776_v0  ;;  %660 = vmatpush3.msra.mxu0 %v197_v26 }
  0x44   :  { %653 = vmatmul.mubr.f32.vlgmr.msra.gmra.mxu1 %v148_v23  ;;  %661 = vmatprep.subr.mxu0 %v776_v0 }
  0x45   :  { %666 = vmatprep.subr.mxu1 %v776_v0  ;;  %662 = vmatpush3.msra.mxu0 %v204_v27 }
  0x46   :  { %663 = vmatprep.mubr.msk.f32.mxu0 %vm777_vm0, %v776_v0  ;;  %667 = vmatpush3.msra.mxu1 %v821_v14 }
  0x47   :  { %664 = vmatmul.mubr.f32.vlgmr.msra.gmra.mxu0 %v819_v13  ;;  %668 = vmatprep.subr.mxu1 %v776_v0 }
  0x48   :  { %669 = vmatpush3.msra.mxu1 %v823_v15  ;;  %674 = vmatprep.mubr.msk.f32.mxu1 %vm777_vm0, %v776_v0 }
  0x49   :  { %670 = vmatprep.subr.mxu1 %v776_v0 }
  0x4a   :  { %671 = vmatpush3.msra.mxu1 %v825_v16 }
  0x4b   :  { %672 = vmatprep.subr.mxu1 %v776_v0 }
  0x4c   :  { %673 = vmatpush3.msra.mxu1 %v827_v17 }
  0x4d   :  { %675 = vmatmul.mubr.f32.vlgmr.msra.gmra.mxu1 %v819_v13 }
  0xf3   :  { %v152_v38 = vpop.f32.mrf.mxu0 }
  0xf4   :  { %v153_v43 = vadd.f32 %v580_v40, %v152_v38 }
  0xf5   :  { %v621_v39 = vpop.f32.mrf.mxu0 }
  0xfb   :  { %v243_v41 = vpop.f32.mrf.mxu1 }
  0xfc   :  { %v244_v46 = vadd.f32 %v243_v41, %v153_v43 }
  0xfd   :  { %v632_v42 = vpop.f32.mrf.mxu1 }
  0xfe   :  { %v323_v44 = vpop.f32.mrf.mxu0 }
  0xff   :  { %v324_v48 = vadd.f32 %v323_v44, %v244_v46 }
 0x100   :  { %v643_v45 = vpop.f32.mrf.mxu0 }
 0x104   :  { %v400_v47 = vpop.f32.mrf.mxu1 }
 0x105   :  { %v401_v51 = vadd.f32 %v400_v47, %v324_v48 }
 0x106   :  { %v654_v49 = vpop.f32.mrf.mxu1 }
 0x107   :  { %v483_v50 = vpop.f32.mrf.mxu0 }
 0x108   :  { %v484_v53 = vadd.f32 %v483_v50, %v401_v51 }
 0x109   :  { %v665_v52 = vpop.f32.mrf.mxu0 }
 0x10d   :  { %v558_v54 = vpop.f32.mrf.mxu1 }
 0x10e   :  { %v559_v55 = vadd.f32 %v558_v54, %v484_v53 }
 0x10f   :  { %v676_v56 = vpop.f32.mrf.mxu1 }
 0x110   :  { %563 = vst.msk [vmem:[#allocation8] sm:$0x3] %vm562_vm2, %v559_v55 }
 0x111   :  { %756 = shalt.err (!%p753_p5)
}
 0x112   :  { %573 = dma.vmem_to_hbm [thread:$0]  %s571_s6, 32, %s889_s4, [#allocation4]  }
 0x113   :  { %769 = dma.done.wait [#allocation4], 32  }
 0x114   :  { %770 = vsyncadd [#allocation4], 4294967264 }
 0x115   :  { %577 = vsyncpa [#allocation3], 1 }
 0x116   :  { %578 = vsyncpa [#allocation6], 1 }
 0x117   :  { %579 = vsyncpa [#allocation4], 1 }

</bundles_post_ra>
